<compile_context>
chip_gen: v7x
topology: tpu7x:2x2x1
jax: 0.10.0
libtpu: 0.0.40
codegen_flags: <defaults>
</compile_context>

<pallas_src>
import jax
import jax.numpy as jnp
from jax import lax
from jax.experimental import pallas as pl
from jax.experimental.pallas import tpu as pltpu


def _vq_kernel(x_ref, e_ref, et_ref, e2_ref, q_ref, sse_ref):
    """One grid step quantizes a (D, ts) channel-major slab of latents.

    x_ref  : (1, D, ts)  f32  latents slab, channel-major (lane-dense)
    e_ref  : (K, D)      f32  codebook
    et_ref : (D, K)      f32  codebook, pre-transposed
    e2_ref : (K, 1)      f32  ||e_k||^2 (hoisted out of the grid loop)
    q_ref  : (1, D, ts)  f32  quantized output slab
    sse_ref: (1, 1, 128) f32  per-tile partial sum of squared error
    """
    xT = x_ref[0]                 # (D, ts)
    e = e_ref[...]                # (K, D)
    eT = et_ref[...]              # (D, K)
    e2 = e2_ref[...]              # (K, 1)

    K = e.shape[0]
    ts = xT.shape[1]

    # Squared distance up to the x-independent ||x||^2 term (doesn't affect
    # the argmin):  dist[k, n] = ||e_k||^2 - 2 <e_k, x_n>
    ex = jnp.dot(e, xT, preferred_element_type=jnp.float32)        # (K, ts)
    dist = e2 - 2.0 * ex                                           # (K, ts)

    # First-occurrence argmin over the codebook axis expressed with plain min
    # reductions (no argmin primitive), producing a one-hot (K, ts).
    min_d = jnp.min(dist, axis=0, keepdims=True)                   # (1, ts)
    iota_k = lax.broadcasted_iota(jnp.int32, (K, ts), 0).astype(jnp.float32)
    cand = jnp.where(dist <= min_d, iota_k, jnp.float32(K))
    inds = jnp.min(cand, axis=0, keepdims=True)                    # (1, ts)
    one_hot = (iota_k == inds).astype(jnp.float32)                 # (K, ts)

    # Nearest-embedding gather as a matmul, still channel-major.
    qT = jnp.dot(eT, one_hot, preferred_element_type=jnp.float32)  # (D, ts)
    q_ref[0] = qT.astype(q_ref.dtype)

    # Per-tile partial SSE, written as a lane-dense 128-wide slab (no masked
    # sub-tile stores, no cross-step accumulation -> grid stays parallel).
    diff = qT - xT
    sse = jnp.sum(diff * diff)
    sse_ref[...] = jnp.full(sse_ref.shape, sse, dtype=sse_ref.dtype)


def _pick_tile(S, max_ts=1024):
    """Largest lane-aligned (multiple-of-128) divisor of S up to max_ts,
    falling back to the full extent (allowed by the (8,128) block rule)."""
    if S <= max_ts:
        return S
    cand = (max_ts // 128) * 128
    while cand >= 128:
        if S % cand == 0:
            return cand
        cand -= 128
    return S


def vector_quantizer(latents_nchw, embedding, beta=0.25, max_ts=1024):
    """Forward pass of VectorQuantizer.

    latents_nchw : (B, D, H, W) float32
    embedding    : (K, D) float32 codebook
    Returns (quantized_nhwc, vq_loss) matching the PyTorch module's forward.
    """
    B, D, H, W = latents_nchw.shape
    K, De = embedding.shape
    assert De == D
    S = H * W

    ts = _pick_tile(S, max_ts)
    # TODO(synk): handle spatial sizes with no lane-aligned divisor via
    # pad+mask; fine for typical power-of-two feature maps.
    assert S % ts == 0, "spatial size must be divisible by the tile size"
    assert ts % 128 == 0 or ts == S, "tile must be lane-aligned or full-extent"
    n_s = S // ts

    x = latents_nchw.reshape(B, D, S).astype(jnp.float32)    # free view of NCHW
    e = embedding.astype(jnp.float32)                        # (K, D)
    eT = e.T                                                 # (D, K), tiny one-time
    e2 = jnp.sum(e * e, axis=1, keepdims=True)               # (K, 1), hoisted

    q_bds, sse_parts = pl.pallas_call(
        _vq_kernel,
        out_shape=(
            jax.ShapeDtypeStruct((B, D, S), jnp.float32),
            jax.ShapeDtypeStruct((B * n_s, 1, 128), jnp.float32),
        ),
        grid_spec=pltpu.PrefetchScalarGridSpec(
            num_scalar_prefetch=0,
            grid=(B, n_s),
            in_specs=[
                pl.BlockSpec((1, D, ts), lambda b, s: (b, 0, s)),   # latents slab
                pl.BlockSpec((K, D), lambda b, s: (0, 0)),          # codebook
                pl.BlockSpec((D, K), lambda b, s: (0, 0)),          # codebook^T
                pl.BlockSpec((K, 1), lambda b, s: (0, 0)),          # ||e||^2
            ],
            out_specs=[
                pl.BlockSpec((1, D, ts), lambda b, s: (b, 0, s)),   # quantized slab
                pl.BlockSpec((1, 1, 128), lambda b, s: (b * n_s + s, 0, 0)),
            ],
        ),
        compiler_params=pltpu.CompilerParams(
            dimension_semantics=("parallel", "parallel"),
        ),
    )(x, e, eT, e2)

    # Final loss reduction outside the kernel (keeps the grid fully parallel).
    sse_total = jnp.sum(sse_parts[:, 0, 0])
    mse = sse_total / float(B * S * D)
    # commitment_loss * beta + embedding_loss == (1 + beta) * mse numerically.
    vq_loss = (1.0 + beta) * mse

    # The reference forward (buggy final `if latents.shape == 4:`) returns the
    # quantized tensor in NHWC layout for 4-D input; one XLA transpose here.
    # TODO(synk): emit NHWC directly from the kernel only if D >= 128 (for
    # tiny D the channel-major store is the lane-dense one).
    q_nhwc = jnp.transpose(q_bds.reshape(B, D, H, W), (0, 2, 3, 1))

    # Straight-through estimator collapses to q numerically in a forward pass.
    return q_nhwc, vq_loss


if __name__ == "__main__":
    key = jax.random.PRNGKey(0)
    k_lat, k_emb = jax.random.split(key)

    B, D, H, W = 2, 4, 16, 16   # NCHW input
    K = 8                        # num_embeddings
    beta = 0.25

    latents = jax.random.normal(k_lat, (B, D, H, W), dtype=jnp.float32)
    # nn.Embedding(K, D).weight.data.uniform_(-1/K, 1/K)
    embedding = jax.random.uniform(k_emb, (K, D), dtype=jnp.float32,
                                   minval=-1.0 / K, maxval=1.0 / K)

    quantized, vq_loss = vector_quantizer(latents, embedding, beta=beta)
    quantized = jax.block_until_ready(quantized)
    vq_loss = jax.block_until_ready(vq_loss)

    # Pure-JAX reference (mirrors the PyTorch forward).
    lat_nhwc = jnp.transpose(latents, (0, 2, 3, 1))
    flat = lat_nhwc.reshape(-1, D)
    dist = (jnp.sum(flat ** 2, axis=1, keepdims=True)
            + jnp.sum(embedding ** 2, axis=1)
            - 2.0 * flat @ embedding.T)
    inds = jnp.argmin(dist, axis=1)
    q_ref = embedding[inds].reshape(B, H, W, D)
    mse_ref = jnp.mean((q_ref - lat_nhwc) ** 2)
    loss_ref = (1.0 + beta) * mse_ref

    assert quantized.shape == (B, H, W, D)
    assert jnp.allclose(quantized, q_ref, atol=1e-5), "quantized mismatch"
    assert jnp.allclose(vq_loss, loss_ref, atol=1e-5, rtol=1e-5), "loss mismatch"

    print("KERNEL_OK")
</pallas_src>

<mosaic_0001>
module attributes {stable_mosaic.version = 11 : i64} {
  func.func @_vq_kernel(%arg0: i32, %arg1: i32, %arg2: memref<1x4x256xf32, #tpu.memory_space<vmem>>, %arg3: memref<8x4xf32, #tpu.memory_space<vmem>>, %arg4: memref<4x8xf32, #tpu.memory_space<vmem>>, %arg5: memref<8x1xf32, #tpu.memory_space<vmem>>, %arg6: memref<1x4x256xf32, #tpu.memory_space<vmem>>, %arg7: memref<1x1x128xf32, #tpu.memory_space<vmem>>) attributes {dimension_semantics = [#tpu.dimension_semantics<parallel>, #tpu.dimension_semantics<parallel>], iteration_bounds = array<i64: 2, 1>, scalar_prefetch = 0 : i64, scratch_operands = 0 : i64, tpu.core_type = #tpu.core_type<tc>, window_params = [{transform_indices = @transform_0, window_bounds = array<i64: 1, 4, 256>}, {pipeline_mode = #tpu.pipeline_mode<synchronous>, transform_indices = @transform_1, window_bounds = array<i64: 8, 4>}, {pipeline_mode = #tpu.pipeline_mode<synchronous>, transform_indices = @transform_2, window_bounds = array<i64: 4, 8>}, {pipeline_mode = #tpu.pipeline_mode<synchronous>, transform_indices = @transform_3, window_bounds = array<i64: 8, 1>}, {transform_indices = @transform_4, window_bounds = array<i64: 1, 4, 256>}, {transform_indices = @transform_5, window_bounds = array<i64: 1, 1, 128>}]} {
    %c0 = arith.constant 0 : index
    %c0_0 = arith.constant 0 : index
    %c0_1 = arith.constant 0 : index
    %0 = vector.load %arg2[%c0, %c0_0, %c0_1] : memref<1x4x256xf32, #tpu.memory_space<vmem>>, vector<1x4x256xf32>
    %1 = vector.shape_cast %0 : vector<1x4x256xf32> to vector<4x256xf32>
    %c0_2 = arith.constant 0 : index
    %c0_3 = arith.constant 0 : index
    %2 = vector.load %arg3[%c0_2, %c0_3] : memref<8x4xf32, #tpu.memory_space<vmem>>, vector<8x4xf32>
    %c0_4 = arith.constant 0 : index
    %c0_5 = arith.constant 0 : index
    %3 = vector.load %arg4[%c0_4, %c0_5] : memref<4x8xf32, #tpu.memory_space<vmem>>, vector<4x8xf32>
    %c0_6 = arith.constant 0 : index
    %c0_7 = arith.constant 0 : index
    %4 = vector.load %arg5[%c0_6, %c0_7] : memref<8x1xf32, #tpu.memory_space<vmem>>, vector<8x1xf32>
    %cst = arith.constant dense<0.000000e+00> : vector<8x256xf32>
    %5 = tpu.matmul %2, %1, %cst {dimension_numbers = #tpu.dot_dimension_numbers<[1], [0], [0], [1], [0, 0, 1, 1], [], []>} : vector<8x4xf32>, vector<4x256xf32>, vector<8x256xf32> -> vector<8x256xf32>
    %cst_8 = arith.constant 2.000000e+00 : f32
    %6 = vector.broadcast %cst_8 : f32 to vector<8x256xf32>
    %7 = arith.mulf %6, %5 : vector<8x256xf32>
    %8 = vector.broadcast %4 : vector<8x1xf32> to vector<8x256xf32>
    %9 = arith.subf %8, %7 : vector<8x256xf32>
    %cst_9 = arith.constant dense<0x7F800000> : vector<256xf32>
    %10 = vector.multi_reduction <minimumf>, %9, %cst_9 [0] : vector<8x256xf32> to vector<256xf32>
    %11 = vector.shape_cast %10 : vector<256xf32> to vector<1x256xf32>
    %12 = tpu.iota {dimensions = array<i32: 0>} : vector<8x256xi32>
    %13 = arith.sitofp %12 : vector<8x256xi32> to vector<8x256xf32>
    %14 = vector.broadcast %11 : vector<1x256xf32> to vector<8x256xf32>
    %15 = arith.cmpf ole, %9, %14 : vector<8x256xf32>
    %cst_10 = arith.constant 8.000000e+00 : f32
    %16 = vector.broadcast %cst_10 : f32 to vector<8x256xf32>
    %17 = arith.select %15, %13, %16 : vector<8x256xi1>, vector<8x256xf32>
    %cst_11 = arith.constant dense<0x7F800000> : vector<256xf32>
    %18 = vector.multi_reduction <minimumf>, %17, %cst_11 [0] : vector<8x256xf32> to vector<256xf32>
    %19 = vector.shape_cast %18 : vector<256xf32> to vector<1x256xf32>
    %20 = vector.broadcast %19 : vector<1x256xf32> to vector<8x256xf32>
    %21 = arith.cmpf oeq, %13, %20 : vector<8x256xf32>
    %22 = arith.extui %21 : vector<8x256xi1> to vector<8x256xi32>
    %23 = arith.sitofp %22 : vector<8x256xi32> to vector<8x256xf32>
    %cst_12 = arith.constant dense<0.000000e+00> : vector<4x256xf32>
    %24 = tpu.matmul %3, %23, %cst_12 {dimension_numbers = #tpu.dot_dimension_numbers<[1], [0], [0], [1], [0, 0, 1, 1], [], []>} : vector<4x8xf32>, vector<8x256xf32>, vector<4x256xf32> -> vector<4x256xf32>
    %c0_13 = arith.constant 0 : index
    %c0_14 = arith.constant 0 : index
    %c0_15 = arith.constant 0 : index
    %25 = vector.load %arg6[%c0_13, %c0_14, %c0_15] : memref<1x4x256xf32, #tpu.memory_space<vmem>>, vector<1x4x256xf32>
    %26 = vector.shape_cast %25 : vector<1x4x256xf32> to vector<4x256xf32>
    %27 = vector.shape_cast %24 : vector<4x256xf32> to vector<1x4x256xf32>
    tpu.vector_store %arg6[%c0_13, %c0_14, %c0_15], %27 {strides = array<i32>} : memref<1x4x256xf32, #tpu.memory_space<vmem>>, vector<1x4x256xf32>,
    %28 = arith.subf %24, %1 : vector<4x256xf32>
    %29 = arith.mulf %28, %28 : vector<4x256xf32>
    %30 = vector.shape_cast %29 : vector<4x256xf32> to vector<1x4x256xf32>
    %cst_16 = arith.constant dense<0.000000e+00> : vector<1xf32>
    %31 = vector.multi_reduction <add>, %30, %cst_16 [1, 2] : vector<1x4x256xf32> to vector<1xf32>
    %32 = vector.shape_cast %31 : vector<1xf32> to vector<1x1x1xf32>
    %33 = vector.extract %32[0, 0, 0] : f32 from vector<1x1x1xf32>
    %34 = vector.broadcast %33 : f32 to vector<1x1x128xf32>
    %c0_17 = arith.constant 0 : index
    %c0_18 = arith.constant 0 : index
    %c0_19 = arith.constant 0 : index
    %35 = vector.load %arg7[%c0_17, %c0_18, %c0_19] : memref<1x1x128xf32, #tpu.memory_space<vmem>>, vector<1x1x128xf32>
    tpu.vector_store %arg7[%c0_17, %c0_18, %c0_19], %34 {strides = array<i32>} : memref<1x1x128xf32, #tpu.memory_space<vmem>>, vector<1x1x128xf32>,
    return
  }
  func.func @transform_0(%arg0: i32, %arg1: i32) -> (i32, i32, i32) {
    %c0_i32 = arith.constant 0 : i32
    %c0_i32_0 = arith.constant 0 : i32
    return %arg0, %c0_i32, %arg1 : i32, i32, i32
  }
  func.func @transform_1(%arg0: i32, %arg1: i32) -> (i32, i32) {
    %c0_i32 = arith.constant 0 : i32
    %c0_i32_0 = arith.constant 0 : i32
    %c0_i32_1 = arith.constant 0 : i32
    return %c0_i32, %c0_i32_0 : i32, i32
  }
  func.func @transform_2(%arg0: i32, %arg1: i32) -> (i32, i32) {
    %c0_i32 = arith.constant 0 : i32
    %c0_i32_0 = arith.constant 0 : i32
    %c0_i32_1 = arith.constant 0 : i32
    return %c0_i32, %c0_i32_0 : i32, i32
  }
  func.func @transform_3(%arg0: i32, %arg1: i32) -> (i32, i32) {
    %c0_i32 = arith.constant 0 : i32
    %c0_i32_0 = arith.constant 0 : i32
    %c0_i32_1 = arith.constant 0 : i32
    return %c0_i32, %c0_i32_0 : i32, i32
  }
  func.func @transform_4(%arg0: i32, %arg1: i32) -> (i32, i32, i32) {
    %c0_i32 = arith.constant 0 : i32
    %c0_i32_0 = arith.constant 0 : i32
    return %arg0, %c0_i32, %arg1 : i32, i32, i32
  }
  func.func @transform_5(%arg0: i32, %arg1: i32) -> (i32, i32, i32) {
    %c1_i32 = arith.constant 1 : i32
    %0 = arith.muli %arg0, %c1_i32 : i32
    %1 = arith.addi %0, %arg1 : i32
    %c0_i32 = arith.constant 0 : i32
    %c0_i32_0 = arith.constant 0 : i32
    %c0_i32_1 = arith.constant 0 : i32
    return %1, %c0_i32, %c0_i32_0 : i32, i32, i32
  }
}

</mosaic_0001>

<bundles_post_ra>
// kernel: tpu_custom_call.1
= control target key start
LH: loop header
LB: loop body
LE: loop exit
PB: predicated region body
PF: predicated region fallthrough
CT: control target
= control target key end

     0   :  { %11 = vsyncpa [#allocation3], 0  ;;  %s1030_s0 = inlined_call_operand.vmem [shape: f32[2,4,256], index: 0, kind: input, shape index: {}]   ;;  %s1031_s1 = inlined_call_operand.vmem [shape: f32[8,4], index: 1, kind: input, shape index: {}]   ;;  %s1032_s2 = inlined_call_operand.vmem [shape: f32[4,8], index: 2, kind: input, shape index: {}]   ;;  %s1033_s3 = inlined_call_operand.vmem [shape: f32[8,1], index: 3, kind: input, shape index: {}]   ;;  %s1034_s4 = inlined_call_operand.hbm [shape: f32[2,4,256], index: 4, kind: output, shape index: {0}]   ;;  %s1035_s5 = inlined_call_operand.hbm [shape: f32[2,1,128], index: 5, kind: output, shape index: {1}]  }
   0x1   :  { %13 = vsyncpa [#allocation3 + $0x1], 0 }
   0x2   :  { %14 = vsyncpa [#allocation5], 0 }
   0x3   :  { %16 = vsyncpa [#allocation5 + $0x1], 0  ;;  %s876_s18 = smov 0   ;;  %s878_s19 = smov 0  }
   0x4   :  { %s880_s20 = smov 0   ;;  %s882_s21 = smov 0  }
   0x5   :  { %s884_s22 = smov 0   ;;  %s886_s23 = smov 0  }
   0x6 LB: > { %s638_s24 = sadd.s32 4294967295, %s839_s23   ;;  %s639_s25 = sadd.s32 4294967294, %s839_s23   ;;  %s839_s23 = sphi %s886_s23, %s22_s23   ;;  %s835_s22 = sphi %s884_s22, %s1042_s22   ;;  %s831_s21 = sphi %s882_s21, %s1041_s21   ;;  %s827_s20 = sphi %s880_s20, %s1040_s20   ;;  %s823_s19 = sphi %s878_s19, %s1039_s19   ;;  %s819_s18 = sphi %s876_s18, %s1038_s18  }
   0x7   : > { %s34_s26 = sadd.s32 1, %s835_s22  ;;  %s134_s27 = sadd.s32 1, %s827_s20 }
   0x8   : > { %p36_p0 = scmp.ge.s32.totalorder %s34_s26, 2  ;;  %p144_p1 = scmp.ne.s32.totalorder %s827_s20, %s823_s19 }
   0x9   : > { %p145_p2 = scmp.eq.s32.totalorder %s638_s24, 1  ;;  %p150_p3 = scmp.ne.s32.totalorder %s823_s19, %s819_s18 }
   0xa   : > { %s1044_s26 = smov (%p36_p0, %s34_s26), 0  ;;  %p151_p5 = scmp.eq.s32.totalorder %s639_s25, 1 }
   0xb   : > { %p916_p4 = por %p145_p2, %p144_p1  ;;  %s129_s29 = ssub.s32 %s835_s22, %s1044_s26 }
   0xc   : > { %p642_p6 = scmp.ge.s32.totalorder %s839_s23, 1  ;;  %p132_p7 = scmp.eq.s32.totalorder %s129_s29, 0 }
   0xd   : > { %p923_p8 = por %p151_p5, %p150_p3  ;;  %p219_p9 = scmp.lt.s32.totalorder %s839_s23, 3 }
   0xe   : > { %s929_s6 = scalar_select %p132_p7, %s827_s20, %s134_s27  }
   0xf   : > { %p220_p10 = pnand %p642_p6, %p219_p9 }
  0x10   : > { %p256_p11 = scmp.lt.s32.totalorder (!%p220_p10), %s831_s21, 1  ;;  %v841_v0 = vmov (!%p220_p10), 0.0   ;;  %v842_v1 = vmov (!%p220_p10), 0   ;;  %v270_v2 = vld [vmem:[%s1033_s3] sm:$0xff] (!%p220_p10)  ;;  %vm277_vm0 = vcmask (!%p220_p10), 1043456   ;;  %vm273_vm1 = vcmask (!%p220_p10), 31744  }
  0x11   : > { %223 = sbr.rel (%p220_p10) target bundleno = 718 (0x2ce), region = 36  ;;  %346 = vmatprep.mubr.f32.mxu0 (!%p220_p10), %v841_v0  ;;  %727 = vset.pattern.permute.xlu0 (!%p220_p10), %v842_v1  ;;  %v268_v5 = vld [vmem:[%s1031_s1] sm:$0xff] (!%p220_p10)  ;;  %v374_v14 = vlaneseq (!%p220_p10)  ;;  %vm399_vm5 = vcmask (!%p220_p10), 64512   ;;  %v843_v43 = vmov (!%p220_p10), 1.0   ;;  %s948_s24 = sand.u32 (!%p220_p10), 1, %s823_s19  }
  0x12   : > { %357 = vperm.xlu0 (!%p220_p10), %727, %v270_v2   ;;  %467 = vmatprep.mubr.f32.mxu1 (!%p220_p10), %v841_v0  ;;  %v269_v42 = vld [vmem:[%s1032_s2] sm:$0xf] (!%p220_p10)  ;;  %s643_s25 = sshll.u32 (!%p220_p10), %s948_s24, 3  ;;  %s661_s29 = sshll.u32 (!%p220_p10), %s831_s21, 7 }
  0x13   : > { %v375_v19 = vshrl.u32 (!%p220_p10), %v374_v14, 7  ;;  %s248_s27 = scalar_lea.vmem (!%p220_p10), [#allocation2], %s643_s25  ;;  %s499_s11 = scalar_lea.sflag (!%p220_p10), [#allocation3], %s948_s24 }
  0x15   : > { %v376_v24 = vcvt.s32.f32 (!%p220_p10), %v375_v19 }
  0x18   : > { %s257_s9 = scalar_select %p256_p11, %s831_s21, 1 }
  0x1a   : > { %s660_s10 = sshll.u32 %s257_s9, 3  ;;  %s957_s9 = scalar_lea.hbm %s1034_s4, %s661_s29 }
  0x1b   : > { %s263_s13 = scalar_lea.vmem %s1030_s0, %s660_s10  ;;  %s519_s10 = sshll.u32 %s248_s27, 4  ;;  %s520_s10 = int_to_ptr.vmem [resolvable:$true] %s519_s10 }
  0x1c   : > { %v267_v3 = vld [vmem:[%s263_s13] sm:$0xff]  ;;  %s729_s12 = scalar_lea.vmem %s520_s10, 128  ;;  %s844_s13 = smov [#allocation2]  }
  0x1d   : > { %v272_v4 = vcombine.high %v267_v3, %v267_v3  ;;  %p730_p12 = scmp.ne.s32.totalorder %s520_s10, %s729_s12  ;;  %s733_s14 = sshll.u32 %s844_s13, 4  ;;  %s734_s14 = int_to_ptr.vmem [resolvable:$false] %s733_s14 }
  0x1e   : > { %s735_s15 = scalar_lea.vmem %s734_s14, 256  ;;  %p736_p1 = scmp.lt.s32.totalorder %s520_s10, %s734_s14 }
  0x1f   : > { %646 = vmatprep.subr.msk.mxu0 %vm277_vm0, %v272_v4  ;;  %p731_p13 = pnand %p730_p12, %p916_p4  ;;  %p737_p2 = scmp.lt.s32.totalorder %s735_s15, %s729_s12 }
  0x20   : > { %647 = vmatpush1.msk.msra.mxu0 %vm277_vm0, %v267_v3 }
  0x21   : > { %648 = vmatmul.mubr.msk.f32.vlgmr.msra.gmra.mrb[0].mxu0 %vm273_vm1, %v268_v5  ;;  %p732_p0 = pneg %p731_p13  ;;  %p738_p3 = por %p737_p2, %p736_p1 }
  0x23   : > { %p739_p5 = pnand %p738_p3, %p732_p0 }
  0x91   : > { %v358_v7 = vpop.permute.xlu0 %357 }
  0xf4   : > { %v348_v6 = vpop.f32.mrb[0].mxu0 }
  0xf5   : > { %v353_v8 = vmul.f32 2.0, %v348_v6  ;;  %v350_v9 = vpop.f32.mrb[1].mxu0 }
  0xf6   : > { %v354_v10 = vmul.f32 2.0, %v350_v9 }
  0xf7   : > { %v360_v11 = vsub.f32 %v358_v7, %v353_v8 }
  0xf8   : > { %v361_v12 = vsub.f32 %v358_v7, %v354_v10 }
  0xf9   : > { %v362_v13 = vrot.slane %v360_v11, 4 }
  0xfa   : > { %v368_v15 = vrot.slane %v361_v12, 4 }
  0xfb   : > { %v363_v16 = vmin.f32 %v360_v11, %v362_v13 }
  0xfc   : > { %v369_v17 = vmin.f32 %v361_v12, %v368_v15 }
  0xfd   : > { %v364_v18 = vrot.slane %v363_v16, 2 }
  0xfe   : > { %v370_v20 = vrot.slane %v369_v17, 2 }
  0xff   : > { %v365_v21 = vmin.f32 %v363_v16, %v364_v18 }
 0x100   : > { %v371_v22 = vmin.f32 %v369_v17, %v370_v20 }
 0x101   : > { %v366_v23 = vrot.slane %v365_v21, 1 }
 0x102   : > { %v372_v25 = vrot.slane %v371_v22, 1 }
 0x103   : > { %v367_v26 = vmin.f32 %v365_v21, %v366_v23 }
 0x104   : > { %v373_v27 = vmin.f32 %v371_v22, %v372_v25 }
 0x105   : > { %vm377_vm2 = vcmp.le.f32.partialorder %v360_v11, %v367_v26 }
 0x106   : > { %vm378_vm3 = vcmp.le.f32.partialorder %v361_v12, %v373_v27  ;;  %v379_v28 = vsel %vm377_vm2, %v376_v24, 8.0 }
 0x107   : > { %v380_v29 = vsel %vm378_vm3, %v376_v24, 8.0  ;;  %v381_v30 = vrot.slane %v379_v28, 4 }
 0x108   : > { %v387_v31 = vrot.slane %v380_v29, 4 }
 0x109   : > { %v382_v32 = vmin.f32 %v379_v28, %v381_v30 }
 0x10a   : > { %v388_v33 = vmin.f32 %v380_v29, %v387_v31 }
 0x10b   : > { %v383_v34 = vrot.slane %v382_v32, 2 }
 0x10c   : > { %v389_v35 = vrot.slane %v388_v33, 2 }
 0x10d   : > { %v384_v36 = vmin.f32 %v382_v32, %v383_v34 }
 0x10e   : > { %v390_v37 = vmin.f32 %v388_v33, %v389_v35 }
 0x10f   : > { %v385_v38 = vrot.slane %v384_v36, 1 }
 0x110   : > { %v391_v39 = vrot.slane %v390_v37, 1 }
 0x111   : > { %v386_v40 = vmin.f32 %v384_v36, %v385_v38 }
 0x112   : > { %v392_v41 = vmin.f32 %v390_v37, %v391_v39 }
 0x113   : > { %vm393_vm6 = vcmp.eq.f32.partialorder %v376_v24, %v386_v40 }
 0x114   : > { %vm394_vm4 = vcmp.eq.f32.partialorder %v376_v24, %v392_v41 }
 0x115   : > { %651 = vmatprep.subr.msk.mxu1 %vm394_vm4, %v843_v43 }
 0x116   : > { %652 = vmatpush1.msk.msra.mxu1 %vm393_vm6, %v843_v43 }
 0x117   : > { %653 = vmatmul.mubr.msk.f32.vlgmr.msra.gmra.mrb[0].mxu1 %vm399_vm5, %v269_v42 }
 0x1ea   : > { %v469_v44 = vpop.f32.mrb[0].mxu1 }
 0x1eb   : > { %v480_v45 = vsub.f32 %v469_v44, %v267_v3  ;;  %v471_v46 = vpop.f32.mrb[1].mxu1 }
 0x1ec   : > { %v476_v47 = vcombine.low %v469_v44, %v471_v46  ;;  %v481_v48 = vsub.f32 %v471_v46, %v272_v4 }
 0x1ed   : > { %v482_v49 = vmul.f32 %v480_v45, %v480_v45 }
 0x1ee   : > { %478 = vst [vmem:[%s248_s27] sm:$0xff] %v476_v47  ;;  %v483_v50 = vmul.f32 %v481_v48, %v481_v48 }
 0x1ef   : > { %v484_v51 = vsel %vm277_vm0, %v482_v49, 0.0 }
 0x1f0   : > { %v485_v52 = vsel %vm277_vm0, %v483_v50, 0.0 }
 0x1f1   : > { %v486_v53 = vadd.f32 %v485_v52, %v484_v51 }
 0x1f3   : > { %487 = vadd.xlane.f32.xlu0 %v486_v53 }
 0x1f4   : > { %742 = shalt.err (!%p739_p5)
}
 0x1f5   : > { %s743_s16 = scalar_lea.hbm %s957_s9, 128  ;;  %s747_s27 = scalar_lea.hbm %s1034_s4, 256 }
 0x1f6   : > { %p744_p6 = scmp.ne.s32.totalorder %s957_s9, %s743_s16  ;;  %p748_p10 = scmp.lt.u32.totalorder %s957_s9, %s1034_s4 }
 0x1f7   : > { %p749_p11 = scmp.lt.u32.totalorder %s747_s27, %s743_s16  ;;  %p751_p13 = scmp.lt.u32.totalorder %s743_s16, %s957_s9 }
 0x1f8   : > { %p745_p7 = pnand %p744_p6, %p916_p4 }
 0x1f9   : > { %p750_p12 = por %p749_p11, %p748_p10 }
 0x1fa   : > { %p746_p9 = pneg %p745_p7 }
 0x1fb   : > { %p752_p0 = por %p751_p13, %p750_p12 }
 0x1fd   : > { %p753_p1 = pnand %p752_p0, %p746_p9 }
 0x1ff   : > { %756 = shalt.err (!%p753_p1)
}
 0x200   : > { %664 = dma.vmem_to_hbm [thread:$0]  (%p916_p4), %s520_s10, 128, %s957_s9, %s499_s11  }
 0x201   : > { %s254_s8 = scalar_lea.vmem [#allocation4], %s948_s24  ;;  %s657_s13 = sshll.u32 %s831_s21, 4 }
 0x202   : > { %s533_s12 = sshll.u32 %s254_s8, 4  ;;  %s984_s11 = scalar_lea.hbm %s1035_s5, %s657_s13  ;;  %s979_s12 = int_to_ptr.vmem [resolvable:$true] %s533_s12 }
 0x203   : > { %s504_s15 = scalar_lea.sflag [#allocation5], %s948_s24  ;;  %s757_s16 = scalar_lea.vmem %s979_s12, 16 }
 0x204   : > { %p758_p2 = scmp.ne.s32.totalorder %s979_s12, %s757_s16  ;;  %s845_s21 = smov [#allocation4]  }
 0x205   : > { %s761_s17 = sshll.u32 %s845_s21, 4  ;;  %s762_s17 = int_to_ptr.vmem [resolvable:$false] %s761_s17 }
 0x206   : > { %p759_p3 = pnand %p758_p2, %p916_p4  ;;  %s763_s25 = scalar_lea.vmem %s762_s17, 32 }
 0x207   : > { %p764_p6 = scmp.lt.s32.totalorder %s979_s12, %s762_s17  ;;  %p765_p7 = scmp.lt.s32.totalorder %s763_s25, %s757_s16 }
 0x208   : > { %p760_p5 = pneg %p759_p3 }
 0x209   : > { %p766_p9 = por %p765_p7, %p764_p6 }
 0x20b   : > { %p767_p10 = pnand %p766_p9, %p760_p5 }
 0x280   : > { %v488_v54 = vpop.xlane.xlu0 %487 }
 0x281   : > { %v489_v55 = vrot.slane %v488_v54, 4 }
 0x283   : > { %v490_v56 = vadd.f32 %v489_v55, %v488_v54 }
 0x285   : > { %v491_v57 = vrot.slane %v490_v56, 2 }
 0x287   : > { %v492_v58 = vadd.f32 %v491_v57, %v490_v56 }
 0x289   : > { %v493_v59 = vrot.slane %v492_v58, 1 }
 0x28b   : > { %v494_v60 = vadd.f32 %v493_v59, %v492_v58 }
 0x28d   : > { %662 = vpush %v494_v60 }
 0x2be   : > { %s663_s14 = spop %662 }
 0x2bf   : > { %v496_v61 = vstv %s663_s14 }
 0x2c0   : > { %497 = vst [vmem:[%s254_s8] sm:$0x1] %v496_v61 }
 0x2c1   : > { %770 = shalt.err (!%p767_p10)
}
 0x2c2   : > { %s771_s24 = scalar_lea.hbm %s984_s11, 16  ;;  %s775_s7 = scalar_lea.hbm %s1035_s5, 32 }
 0x2c3   : > { %p772_p11 = scmp.ne.s32.totalorder %s984_s11, %s771_s24  ;;  %p776_p0 = scmp.lt.u32.totalorder %s984_s11, %s1035_s5 }
 0x2c4   : > { %p777_p1 = scmp.lt.u32.totalorder %s775_s7, %s771_s24  ;;  %p779_p3 = scmp.lt.u32.totalorder %s771_s24, %s984_s11 }
 0x2c5   : > { %p773_p12 = pnand %p772_p11, %p916_p4 }
 0x2c6   : > { %p778_p2 = por %p777_p1, %p776_p0 }
 0x2c7   : > { %p774_p13 = pneg %p773_p12 }
 0x2c8   : > { %p780_p5 = por %p779_p3, %p778_p2 }
 0x2ca   : > { %p781_p6 = pnand %p780_p5, %p774_p13 }
 0x2cc   : > { %784 = shalt.err (!%p781_p6)
}
 0x2cd   : > { %665 = dma.vmem_to_hbm [thread:$0]  (%p916_p4), %s979_s12, 16, %s984_s11, %s504_s15  }
 0x2ce PF: > { %p675_p7 = scmp.ge.s32.totalorder %s839_s23, 2  ;;  %s545_s14 = sand.u32 1, %s819_s18  }
 0x2cf   : > { %s546_s9 = scalar_lea.sflag [#allocation3], %s545_s14 }
 0x2d0   : > { %p669_p9 = pnand %p675_p7, %p923_p8 }
 0x2d2   : > { %810 = dma.done.wait (!%p669_p9), %s546_s9, 128  }
 0x2d3   : > { %812 = vsyncadd (!%p669_p9), %s546_s9, 4294967168  ;;  %s555_s10 = scalar_lea.sflag [#allocation5], %s545_s14 }
 0x2d4   : > { %814 = dma.done.wait (!%p669_p9), %s555_s10, 16  }
 0x2d5   : > { %816 = vsyncadd (!%p669_p9), %s555_s10, 4294967280  ;;  %s22_s23 = sadd.s32 1, %s839_s23   ;;  %s1038_s18 = smov %s823_s19 }
 0x2d6   : > { %p19_p10 = scmp.ge.s32.totalorder %s22_s23, 4   ;;  %s1039_s19 = smov %s827_s20 }
 0x2d7   : > { %s1040_s20 = smov %s929_s6  ;;  %s1041_s21 = smov %s835_s22 }
 0x2d8   : > { %s1042_s22 = smov %s1044_s26  ;;  %21 = sbr.rel (!%p19_p10) target bundleno = 6 (0x6), region = 88 }
 0x2df   :  { %559 = vsyncpa [#allocation3], 1 }
 0x2e0   :  { %561 = vsyncpa [#allocation3 + $0x1], 1 }
 0x2e1   :  { %562 = vsyncpa [#allocation5], 1 }
 0x2e2   :  { %564 = vsyncpa [#allocation5 + $0x1], 1 }

</bundles_post_ra>
